<compile_context>
chip_gen: v7x
topology: tpu7x:2x2x1
jax: 0.10.0
libtpu: 0.0.40
codegen_flags: <defaults>
</compile_context>

<pallas_src>
import numpy as np
import jax
import jax.numpy as jnp
from jax.experimental import pallas as pl
from jax.experimental.pallas import tpu as pltpu

# ---- model hyper-parameters (from the PyTorch __init__) --------------------
D_IN = 23 * 5          # 115
H1 = 128
H2 = 64
D_OUT = 1


def _round_up(x, m):
    return ((x + m - 1) // m) * m


def ffn_kernel(x_ref, w1_ref, b1_ref, w2_ref, b2_ref, w3_ref, b3_ref, o_ref):
    # fc1: (TB, 115) @ (115, 128) + bias, ReLU  -- single MXU matmul,
    # contraction K=115 handled (padded/masked) by Mosaic.
    h1 = jnp.maximum(
        jnp.dot(x_ref[...], w1_ref[...], preferred_element_type=jnp.float32)
        + b1_ref[...], 0.0)                                    # (TB, 128) f32

    # fc2: (TB, 128) @ (128, 64) + bias, ReLU  -- single MXU matmul.
    h2 = jnp.maximum(
        jnp.dot(h1.astype(w2_ref.dtype), w2_ref[...],
                preferred_element_type=jnp.float32)
        + b2_ref[...], 0.0)                                    # (TB, 64) f32

    # fc3: Linear(64, 1) as VPU multiply + lane reduction (no N=1 MXU matmul),
    # then one cheap XLU transpose so the store is lane-dense (1, TB).
    y = jnp.sum(h2 * w3_ref[...], axis=-1, keepdims=True) + b3_ref[0]  # (TB, 1)
    o_ref[...] = jnp.transpose(y)                               # (1, TB)


def ffn_forward(x, params, *, batch_tile=2048, use_bf16_mxu=False):
    """x: (B, 115). Returns (B, 1) float32."""
    w1, b1, w2, b2, w3, b3 = params
    B = x.shape[0]
    assert x.shape[1] == D_IN

    # ---- batch tiling (no wrapper-side padding of x) ------------------------
    if B > batch_tile:
        TB = batch_tile                      # mult of 8; ragged tail handled
    elif B >= 256:
        TB = _round_up(pl.cdiv(B, 2), 8)     # >=2 steps -> both TCs on v7x
    else:
        TB = B                               # single full-batch block
    num_tiles = pl.cdiv(B, TB)

    # TODO(synk): use_bf16_mxu=True on v6e/v7x for ~2x MXU rate / half x bytes;
    # validation tolerance must then be loosened to ~1e-2.
    mxu_dtype = jnp.bfloat16 if use_bf16_mxu else jnp.float32

    x_in = x.astype(mxu_dtype)                                 # (B, 115)
    w1_t = jnp.transpose(w1).astype(mxu_dtype)                 # (115, 128)
    w2_t = jnp.transpose(w2).astype(mxu_dtype)                 # (128, 64)
    w3_r = w3.reshape(1, H2).astype(jnp.float32)               # (1, 64)
    b1_r = b1.reshape(1, H1).astype(jnp.float32)
    b2_r = b2.reshape(1, H2).astype(jnp.float32)
    b3_r = b3.reshape(1).astype(jnp.float32)                   # SMEM scalar

    out = pl.pallas_call(
        ffn_kernel,
        out_shape=jax.ShapeDtypeStruct((num_tiles, TB), jnp.float32),
        grid=(num_tiles,),
        in_specs=[
            pl.BlockSpec((TB, D_IN), lambda i: (i, 0)),        # x tile (no pad)
            pl.BlockSpec((D_IN, H1), lambda i: (0, 0)),        # w1
            pl.BlockSpec((1, H1),    lambda i: (0, 0)),        # b1
            pl.BlockSpec((H1, H2),   lambda i: (0, 0)),        # w2
            pl.BlockSpec((1, H2),    lambda i: (0, 0)),        # b2
            pl.BlockSpec((1, H2),    lambda i: (0, 0)),        # w3
            pl.BlockSpec(memory_space=pltpu.MemorySpace.SMEM), # b3 scalar
        ],
        out_specs=pl.BlockSpec((1, TB), lambda i: (i, 0)),     # lane-dense out
        compiler_params=pltpu.CompilerParams(
            dimension_semantics=("parallel",),                 # megacore shard
        ),
    )(x_in, w1_t, b1_r, w2_t, b2_r, w3_r, b3_r)

    # Drop tail-tile garbage rows (if any) and restore (B, 1) shape.
    return out.reshape(-1)[:B].reshape(B, D_OUT)


def ref_forward(x, params):
    """Pure-JAX reference matching the PyTorch forward (for validation)."""
    w1, b1, w2, b2, w3, b3 = params
    h = jax.nn.relu(x @ w1.T + b1[None, :])
    h = jax.nn.relu(h @ w2.T + b2[None, :])
    return h @ w3.T + b3[None, :]


def init_params(key):
    ks = jax.random.split(key, 6)
    w1 = jax.random.normal(ks[0], (H1, D_IN), jnp.float32) * 0.1
    b1 = jax.random.normal(ks[1], (H1,), jnp.float32) * 0.1
    w2 = jax.random.normal(ks[2], (H2, H1), jnp.float32) * 0.05
    b2 = jax.random.normal(ks[3], (H2,), jnp.float32) * 0.1
    w3 = jax.random.normal(ks[4], (D_OUT, H2), jnp.float32) * 0.1
    b3 = jax.random.normal(ks[5], (D_OUT,), jnp.float32) * 0.1
    return (w1, b1, w2, b2, w3, b3)


if __name__ == "__main__":
    key = jax.random.PRNGKey(0)
    k_param, k_x = jax.random.split(key)
    params = init_params(k_param)

    B = 2
    x = jax.random.normal(k_x, (B, D_IN), jnp.float32)        # (2, 115)

    fwd = jax.jit(lambda xx: ffn_forward(xx, params))
    out = jax.block_until_ready(fwd(x))

    ref = jax.block_until_ready(ref_forward(x, params))
    np.testing.assert_allclose(np.asarray(out), np.asarray(ref),
                               rtol=1e-4, atol=1e-4)
    assert out.shape == (B, 1)
    print("KERNEL_OK")
</pallas_src>

<mosaic_0001>
module attributes {stable_mosaic.version = 11 : i64} {
  func.func @ffn_kernel(%arg0: i32, %arg1: memref<2x115xf32, #tpu.memory_space<vmem>>, %arg2: memref<115x128xf32, #tpu.memory_space<vmem>>, %arg3: memref<1x128xf32, #tpu.memory_space<vmem>>, %arg4: memref<128x64xf32, #tpu.memory_space<vmem>>, %arg5: memref<1x64xf32, #tpu.memory_space<vmem>>, %arg6: memref<1x64xf32, #tpu.memory_space<vmem>>, %arg7: memref<1xf32, #tpu.memory_space<smem>>, %arg8: memref<1x2xf32, #tpu.memory_space<vmem>>) attributes {dimension_semantics = [#tpu.dimension_semantics<parallel>], iteration_bounds = array<i64: 1>, scalar_prefetch = 0 : i64, scratch_operands = 0 : i64, tpu.core_type = #tpu.core_type<tc>, window_params = [{transform_indices = @transform_0, window_bounds = array<i64: 2, 115>}, {pipeline_mode = #tpu.pipeline_mode<synchronous>, transform_indices = @transform_1, window_bounds = array<i64: 115, 128>}, {pipeline_mode = #tpu.pipeline_mode<synchronous>, transform_indices = @transform_2, window_bounds = array<i64: 1, 128>}, {pipeline_mode = #tpu.pipeline_mode<synchronous>, transform_indices = @transform_3, window_bounds = array<i64: 128, 64>}, {pipeline_mode = #tpu.pipeline_mode<synchronous>, transform_indices = @transform_4, window_bounds = array<i64: 1, 64>}, {pipeline_mode = #tpu.pipeline_mode<synchronous>, transform_indices = @transform_5, window_bounds = array<i64: 1, 64>}, {transform_indices = @transform_6, window_bounds = array<i64: 1>}, {transform_indices = @transform_7, window_bounds = array<i64: 1, 2>}]} {
    %c0 = arith.constant 0 : index
    %c0_0 = arith.constant 0 : index
    %0 = vector.load %arg1[%c0, %c0_0] : memref<2x115xf32, #tpu.memory_space<vmem>>, vector<2x115xf32>
    %c0_1 = arith.constant 0 : index
    %c0_2 = arith.constant 0 : index
    %1 = vector.load %arg2[%c0_1, %c0_2] : memref<115x128xf32, #tpu.memory_space<vmem>>, vector<115x128xf32>
    %cst = arith.constant dense<0.000000e+00> : vector<2x128xf32>
    %2 = tpu.matmul %0, %1, %cst {dimension_numbers = #tpu.dot_dimension_numbers<[1], [0], [0], [1], [0, 0, 1, 1], [], []>} : vector<2x115xf32>, vector<115x128xf32>, vector<2x128xf32> -> vector<2x128xf32>
    %c0_3 = arith.constant 0 : index
    %c0_4 = arith.constant 0 : index
    %3 = vector.load %arg3[%c0_3, %c0_4] : memref<1x128xf32, #tpu.memory_space<vmem>>, vector<1x128xf32>
    %4 = vector.broadcast %3 : vector<1x128xf32> to vector<2x128xf32>
    %5 = arith.addf %2, %4 : vector<2x128xf32>
    %cst_5 = arith.constant 0.000000e+00 : f32
    %6 = vector.broadcast %cst_5 : f32 to vector<2x128xf32>
    %7 = arith.maximumf %5, %6 : vector<2x128xf32>
    %c0_6 = arith.constant 0 : index
    %c0_7 = arith.constant 0 : index
    %8 = vector.load %arg4[%c0_6, %c0_7] : memref<128x64xf32, #tpu.memory_space<vmem>>, vector<128x64xf32>
    %cst_8 = arith.constant dense<0.000000e+00> : vector<2x64xf32>
    %9 = tpu.matmul %7, %8, %cst_8 {dimension_numbers = #tpu.dot_dimension_numbers<[1], [0], [0], [1], [0, 0, 1, 1], [], []>} : vector<2x128xf32>, vector<128x64xf32>, vector<2x64xf32> -> vector<2x64xf32>
    %c0_9 = arith.constant 0 : index
    %c0_10 = arith.constant 0 : index
    %10 = vector.load %arg5[%c0_9, %c0_10] : memref<1x64xf32, #tpu.memory_space<vmem>>, vector<1x64xf32>
    %11 = vector.broadcast %10 : vector<1x64xf32> to vector<2x64xf32>
    %12 = arith.addf %9, %11 : vector<2x64xf32>
    %cst_11 = arith.constant 0.000000e+00 : f32
    %13 = vector.broadcast %cst_11 : f32 to vector<2x64xf32>
    %14 = arith.maximumf %12, %13 : vector<2x64xf32>
    %c0_12 = arith.constant 0 : index
    %c0_13 = arith.constant 0 : index
    %15 = vector.load %arg6[%c0_12, %c0_13] : memref<1x64xf32, #tpu.memory_space<vmem>>, vector<1x64xf32>
    %16 = vector.broadcast %15 : vector<1x64xf32> to vector<2x64xf32>
    %17 = arith.mulf %14, %16 : vector<2x64xf32>
    %cst_14 = arith.constant dense<0.000000e+00> : vector<2xf32>
    %18 = vector.multi_reduction <add>, %17, %cst_14 [1] : vector<2x64xf32> to vector<2xf32>
    %19 = vector.shape_cast %18 : vector<2xf32> to vector<2x1xf32>
    %c0_15 = arith.constant 0 : index
    %20 = memref.load %arg7[%c0_15] : memref<1xf32, #tpu.memory_space<smem>>
    %21 = vector.broadcast %20 : f32 to vector<2x1xf32>
    %22 = arith.addf %19, %21 : vector<2x1xf32>
    %23 = tpu.transpose %22, [1, 0] : vector<2x1xf32> -> vector<1x2xf32>
    %c0_16 = arith.constant 0 : index
    %c0_17 = arith.constant 0 : index
    %24 = vector.load %arg8[%c0_16, %c0_17] : memref<1x2xf32, #tpu.memory_space<vmem>>, vector<1x2xf32>
    tpu.vector_store %arg8[%c0_16, %c0_17], %23 {strides = array<i32>} : memref<1x2xf32, #tpu.memory_space<vmem>>, vector<1x2xf32>,
    return
  }
  func.func @transform_0(%arg0: i32) -> (i32, i32) {
    %c0_i32 = arith.constant 0 : i32
    %c0_i32_0 = arith.constant 0 : i32
    return %arg0, %c0_i32 : i32, i32
  }
  func.func @transform_1(%arg0: i32) -> (i32, i32) {
    %c0_i32 = arith.constant 0 : i32
    %c0_i32_0 = arith.constant 0 : i32
    %c0_i32_1 = arith.constant 0 : i32
    return %c0_i32, %c0_i32_0 : i32, i32
  }
  func.func @transform_2(%arg0: i32) -> (i32, i32) {
    %c0_i32 = arith.constant 0 : i32
    %c0_i32_0 = arith.constant 0 : i32
    %c0_i32_1 = arith.constant 0 : i32
    return %c0_i32, %c0_i32_0 : i32, i32
  }
  func.func @transform_3(%arg0: i32) -> (i32, i32) {
    %c0_i32 = arith.constant 0 : i32
    %c0_i32_0 = arith.constant 0 : i32
    %c0_i32_1 = arith.constant 0 : i32
    return %c0_i32, %c0_i32_0 : i32, i32
  }
  func.func @transform_4(%arg0: i32) -> (i32, i32) {
    %c0_i32 = arith.constant 0 : i32
    %c0_i32_0 = arith.constant 0 : i32
    %c0_i32_1 = arith.constant 0 : i32
    return %c0_i32, %c0_i32_0 : i32, i32
  }
  func.func @transform_5(%arg0: i32) -> (i32, i32) {
    %c0_i32 = arith.constant 0 : i32
    %c0_i32_0 = arith.constant 0 : i32
    %c0_i32_1 = arith.constant 0 : i32
    return %c0_i32, %c0_i32_0 : i32, i32
  }
  func.func @transform_6(%arg0: i32) -> i32 {
    %c0_i32 = arith.constant 0 : i32
    %c0_i32_0 = arith.constant 0 : i32
    return %c0_i32 : i32
  }
  func.func @transform_7(%arg0: i32) -> (i32, i32) {
    %c0_i32 = arith.constant 0 : i32
    %c0_i32_0 = arith.constant 0 : i32
    return %arg0, %c0_i32 : i32, i32
  }
}

</mosaic_0001>

<bundles_post_ra>
// kernel: _lambda_.1
= control target key start
LH: loop header
LB: loop body
LE: loop exit
PB: predicated region body
PF: predicated region fallthrough
CT: control target
= control target key end

     0   :  { %13 = vsyncpa [#allocation4], 0  ;;  %s715_s0 = inlined_call_operand.hbm [shape: f32[2,115], index: 0, kind: input, shape index: {}]   ;;  %s716_s1 = inlined_call_operand.hbm [shape: f32[115,128], index: 1, kind: input, shape index: {}]   ;;  %s717_s2 = inlined_call_operand.vmem [shape: f32[1,128], index: 2, kind: input, shape index: {}]   ;;  %s718_s3 = inlined_call_operand.hbm [shape: f32[128,64], index: 3, kind: input, shape index: {}]   ;;  %s719_s4 = inlined_call_operand.vmem [shape: f32[1,64], index: 4, kind: input, shape index: {}]   ;;  %s720_s5 = inlined_call_operand.vmem [shape: f32[1,64], index: 5, kind: input, shape index: {}]   ;;  %s721_s6 = inlined_call_operand.<no memory space> [shape: f32[1], index: 6, kind: input, shape index: {}]   ;;  %s722_s7 = inlined_call_operand.hbm [shape: f32[1,2], index: 7, kind: output, shape index: {}]  }
   0x1   :  { %14 = vsyncpa [#allocation7], 0 }
   0x2   :  { %15 = vsyncpa [#allocation5], 0  ;;  %s582_s24 = smov [#allocation6]   ;;  %s488_s28 = scalar_lea.hbm %s716_s1, 1920 }
   0x3   :  { %s31_s25 = sshll.u32 %s582_s24, 4  ;;  %p489_p0 = scmp.ne.s32.totalorder %s716_s1, %s488_s28  ;;  %s32_s25 = int_to_ptr.vmem [resolvable:$true] %s31_s25 }
   0x4   :  { %p492_p1 = scmp.lt.u32.totalorder %s488_s28, %s716_s1 }
   0x6   :  { %p494_p2 = pnand %p492_p1, %p489_p0 }
   0x8   :  { %497 = shalt.err (!%p494_p2)
}
   0x9   :  { %s498_s10 = scalar_lea.vmem %s32_s25, 1920  ;;  %p503_p4 = scmp.lt.s32.totalorder %s32_s25, %s32_s25 }
   0xa   :  { %p499_p3 = scmp.ne.s32.totalorder %s32_s25, %s498_s10  ;;  %p504_p5 = scmp.lt.s32.totalorder %s498_s10, %s498_s10 }
   0xc   :  { %p505_p6 = por %p504_p5, %p503_p4 }
   0xe   :  { %p506_p7 = pnand %p505_p6, %p499_p3 }
  0x10   :  { %509 = shalt.err (!%p506_p7)
}
  0x11   :  { %s583_s11 = smov 128   ;;  %s584_s12 = smov 8  }
  0x12   :  { %37 = dma.hbm_to_vmem [thread:$0]  %s716_s1, 1920, %s32_s25, [#allocation7], %s583_s11, %s583_s11, %s584_s12  }
  0x13   :  { %s585_s15 = smov [#allocation3]   ;;  %s586_s17 = smov [#allocation8]  }
  0x14   :  { %s22_s16 = sshll.u32 %s585_s15, 4  ;;  %s45_s18 = sshll.u32 %s586_s17, 4  ;;  %s23_s16 = int_to_ptr.vmem [resolvable:$true] %s22_s16  ;;  %s46_s18 = int_to_ptr.vmem [resolvable:$true] %s45_s18 }
  0x15   :  { %s510_s21 = scalar_lea.hbm %s715_s0, 32 }
  0x16   :  { %p511_p8 = scmp.ne.s32.totalorder %s715_s0, %s510_s21  ;;  %p514_p9 = scmp.lt.u32.totalorder %s510_s21, %s715_s0 }
  0x18   :  { %p516_p10 = pnand %p514_p9, %p511_p8 }
  0x1a   :  { %519 = shalt.err (!%p516_p10)
}
  0x1b   :  { %s520_s1 = scalar_lea.vmem %s23_s16, 32  ;;  %p525_p12 = scmp.lt.s32.totalorder %s23_s16, %s23_s16 }
  0x1c   :  { %p521_p11 = scmp.ne.s32.totalorder %s23_s16, %s520_s1  ;;  %p526_p13 = scmp.lt.s32.totalorder %s520_s1, %s520_s1 }
  0x1e   :  { %p527_p0 = por %p526_p13, %p525_p12 }
  0x20   :  { %p528_p1 = pnand %p527_p0, %p521_p11 }
  0x22   :  { %531 = shalt.err (!%p528_p1)
}
  0x23   :  { %25 = dma.hbm_to_vmem [thread:$0]  %s715_s0, 32, %s23_s16, [#allocation4]  }
  0x24   :  { %s532_s30 = scalar_lea.hbm %s718_s3, 2048 }
  0x25   :  { %p533_p2 = scmp.ne.s32.totalorder %s718_s3, %s532_s30  ;;  %p536_p3 = scmp.lt.u32.totalorder %s532_s30, %s718_s3 }
  0x27   :  { %p538_p4 = pnand %p536_p3, %p533_p2 }
  0x29   :  { %541 = shalt.err (!%p538_p4)
}
  0x2a   :  { %s542_s14 = scalar_lea.vmem %s46_s18, 2048  ;;  %p547_p6 = scmp.lt.s32.totalorder %s46_s18, %s46_s18 }
  0x2b   :  { %p543_p5 = scmp.ne.s32.totalorder %s46_s18, %s542_s14  ;;  %p548_p7 = scmp.lt.s32.totalorder %s542_s14, %s542_s14 }
  0x2d   :  { %p549_p8 = por %p548_p7, %p547_p6 }
  0x2f   :  { %p550_p9 = pnand %p549_p8, %p543_p5 }
  0x31   :  { %553 = shalt.err (!%p550_p9)
}
  0x32   :  { %51 = dma.hbm_to_vmem [thread:$0]  %s718_s3, 2048, %s46_s18, [#allocation7], %s583_s11, %s583_s11, %s584_s12  }
  0x33   :  { %576 = dma.done.wait [#allocation4], 32  }
  0x34   :  { %577 = vsyncadd [#allocation4], 4294967264 }
  0x35   :  { %578 = dma.done.wait [#allocation7], 3968  }
  0x36   :  { %579 = vsyncadd [#allocation7], 4294963328  ;;  %v587_v0 = vmov 0.0|0.0   ;;  %vm588_vm0 = vmmov 0   ;;  %v589_v1 = vmov 0.0   ;;  %v68_v2 = vld [vmem:[#allocation6] sm:$0xff]  ;;  %v276_v62 = vstv %s721_s6 }
  0x37   :  { %434 = vmatprep.subr.bf16.mxu0 %v587_v0  ;;  %396 = vmatprep.mubr.msk.f32.mxu0 %vm588_vm0, %v589_v1  ;;  %v69_v3 = vld [vmem:[#allocation6 + $0x8] sm:$0xff]  ;;  %v70_v4 = vld [vmem:[#allocation6 + $0x10] sm:$0xff]  ;;  %v71_v6 = vld [vmem:[#allocation6 + $0x18] sm:$0xff]  ;;  %vm94_vm1 = vcmask 1042432   ;;  %vm90_vm2 = vcmask 941056   ;;  %vm271_vm3 = vcmask 517120  }
  0x38   :  { %455 = vmatprep.subr.bf16.mxu1 %v587_v0  ;;  %431 = vmatprep.mubr.msk.f32.mxu1 %vm588_vm0, %v589_v1  ;;  %v435_v5 = vpack.c.bf16 %v69_v3, %v68_v2  ;;  %v438_v7 = vpack.c.bf16 %v71_v6, %v70_v4  ;;  %v72_v8 = vld [vmem:[#allocation6 + $0x20] sm:$0xff]  ;;  %v73_v9 = vld [vmem:[#allocation6 + $0x28] sm:$0xff]  ;;  %v169_v10 = vld [vmem:[#allocation8] sm:$0xff]  ;;  %vm310_vm4 = vcmask 8192  }
  0x39   :  { %v170_v11 = vld [vmem:[#allocation8 + $0x8] sm:$0xff]  ;;  %v171_v13 = vld [vmem:[#allocation8 + $0x10] sm:$0xff]  ;;  %v172_v14 = vld [vmem:[#allocation8 + $0x18] sm:$0xff]  ;;  %v441_v15 = vpack.c.bf16 %v73_v9, %v72_v8 }
  0x3a   :  { %436 = vmatpush3.bf16.msra.mxu0 %v435_v5  ;;  %v456_v12 = vpack.c.bf16 %v170_v11, %v169_v10  ;;  %v74_v16 = vld [vmem:[#allocation6 + $0x30] sm:$0xff]  ;;  %v75_v17 = vld [vmem:[#allocation6 + $0x38] sm:$0xff]  ;;  %v459_v18 = vpack.c.bf16 %v172_v14, %v171_v13  ;;  %v174_v20 = vld [vmem:[#allocation8 + $0x28] sm:$0xff] }
  0x3b   :  { %437 = vmatprep.subr.bf16.mxu0 %v587_v0  ;;  %v173_v19 = vld [vmem:[#allocation8 + $0x20] sm:$0xff]  ;;  %v444_v21 = vpack.c.bf16 %v75_v17, %v74_v16  ;;  %v76_v22 = vld [vmem:[#allocation6 + $0x40] sm:$0xff]  ;;  %v77_v23 = vld [vmem:[#allocation6 + $0x48] sm:$0xff] }
  0x3c   :  { %457 = vmatpush3.bf16.msra.mxu1 %v456_v12  ;;  %v462_v24 = vpack.c.bf16 %v174_v20, %v173_v19  ;;  %v175_v25 = vld [vmem:[#allocation8 + $0x30] sm:$0xff]  ;;  %v176_v26 = vld [vmem:[#allocation8 + $0x38] sm:$0xff]  ;;  %v447_v27 = vpack.c.bf16 %v77_v23, %v76_v22  ;;  %v79_v29 = vld [vmem:[#allocation6 + $0x58] sm:$0xff] }
  0x3d   :  { %458 = vmatprep.subr.bf16.mxu1 %v587_v0  ;;  %v78_v28 = vld [vmem:[#allocation6 + $0x50] sm:$0xff]  ;;  %v465_v30 = vpack.c.bf16 %v176_v26, %v175_v25  ;;  %v177_v31 = vld [vmem:[#allocation8 + $0x40] sm:$0xff]  ;;  %v178_v32 = vld [vmem:[#allocation8 + $0x48] sm:$0xff] }
  0x3e   :  { %439 = vmatpush3.bf16.msra.mxu0 %v438_v7  ;;  %v450_v33 = vpack.c.bf16 %v79_v29, %v78_v28  ;;  %v80_v34 = vld [vmem:[#allocation6 + $0x60] sm:$0xff]  ;;  %v81_v35 = vld [vmem:[#allocation6 + $0x68] sm:$0xff]  ;;  %v468_v36 = vpack.c.bf16 %v178_v32, %v177_v31  ;;  %v180_v38 = vld [vmem:[#allocation8 + $0x58] sm:$0xff] }
  0x3f   :  { %440 = vmatprep.subr.bf16.mxu0 %v587_v0  ;;  %v179_v37 = vld [vmem:[#allocation8 + $0x50] sm:$0xff]  ;;  %v453_v39 = vpack.c.bf16 %v81_v35, %v80_v34  ;;  %v181_v41 = vld [vmem:[#allocation8 + $0x60] sm:$0xff]  ;;  %v182_v42 = vld [vmem:[#allocation8 + $0x68] sm:$0xff] }
  0x40   :  { %460 = vmatpush3.bf16.msra.mxu1 %v459_v18  ;;  %v471_v40 = vpack.c.bf16 %v180_v38, %v179_v37  ;;  %v82_v43 = vld [vmem:[#allocation6 + $0x70] sm:$0x7]  ;;  %v474_v44 = vpack.c.bf16 %v182_v42, %v181_v41  ;;  %v67_v45 = vld [vmem:[#allocation3] sm:$0x3]  ;;  %v183_v46 = vld [vmem:[#allocation8 + $0x70] sm:$0xff] }
  0x41   :  { %461 = vmatprep.subr.bf16.mxu1 %v587_v0  ;;  %v184_v47 = vld [vmem:[#allocation8 + $0x78] sm:$0xff]  ;;  %v328_v49 = vld [vmem:[%s717_s2] ss:$0 sm:$0xff] }
  0x42   :  { %442 = vmatpush3.bf16.msra.mxu0 %v441_v15  ;;  %v477_v48 = vpack.c.bf16 %v184_v47, %v183_v46  ;;  %v331_v54 = vld [vmem:[%s719_s4] ss:$0 sm:$0xff]  ;;  %s590_s4 = smov [#allocation9]  }
  0x43   :  { %443 = vmatprep.subr.bf16.mxu0 %v587_v0  ;;  %v332_v58 = vld [vmem:[%s720_s5] ss:$0 sm:$0xff]  ;;  %s318_s20 = sshll.u32 %s590_s4, 4  ;;  %s319_s20 = int_to_ptr.vmem [resolvable:$true] %s318_s20 }
  0x44   :  { %463 = vmatpush3.bf16.msra.mxu1 %v462_v24  ;;  %s554_s21 = scalar_lea.vmem %s319_s20, 16  ;;  %s558_s5 = scalar_lea.vmem %s319_s20, 32 }
  0x45   :  { %464 = vmatprep.subr.bf16.mxu1 %v587_v0  ;;  %p555_p10 = scmp.ne.s32.totalorder %s319_s20, %s554_s21  ;;  %p559_p11 = scmp.lt.s32.totalorder %s319_s20, %s319_s20 }
  0x46   :  { %445 = vmatpush3.bf16.msra.mxu0 %v444_v21  ;;  %p560_p12 = scmp.lt.s32.totalorder %s558_s5, %s554_s21 }
  0x47   :  { %446 = vmatprep.subr.bf16.mxu0 %v587_v0 }
  0x48   :  { %466 = vmatpush3.bf16.msra.mxu1 %v465_v30  ;;  %p561_p13 = por %p560_p12, %p559_p11 }
  0x49   :  { %467 = vmatprep.subr.bf16.mxu1 %v587_v0 }
  0x4a   :  { %448 = vmatpush3.bf16.msra.mxu0 %v447_v27  ;;  %p562_p0 = pnand %p561_p13, %p555_p10 }
  0x4b   :  { %449 = vmatprep.subr.bf16.mxu0 %v587_v0 }
  0x4c   :  { %469 = vmatpush3.bf16.msra.mxu1 %v468_v36 }
  0x4d   :  { %470 = vmatprep.subr.bf16.mxu1 %v587_v0 }
  0x4e   :  { %451 = vmatpush3.bf16.msra.mxu0 %v450_v33 }
  0x4f   :  { %452 = vmatprep.subr.bf16.mxu0 %v587_v0 }
  0x50   :  { %472 = vmatpush3.bf16.msra.mxu1 %v471_v40 }
  0x51   :  { %473 = vmatprep.subr.bf16.mxu1 %v587_v0 }
  0x52   :  { %454 = vmatpush3.bf16.msra.mxu0 %v453_v39 }
  0x53   :  { %394 = vmatprep.subr.mxu0 %v589_v1 }
  0x54   :  { %475 = vmatpush3.bf16.msra.mxu1 %v474_v44 }
  0x55   :  { %476 = vmatprep.subr.bf16.mxu1 %v587_v0 }
  0x56   :  { %395 = vmatpush3.msk.msra.mxu0 %vm94_vm1, %v82_v43 }
  0x57   :  { %397 = vmatmul.mubr.msk.f32.vlgmr.msra.gmra.mrb[0].mxu0 %vm90_vm2, %v67_v45 }
  0x58   :  { %478 = vmatpush3.bf16.msra.mxu1 %v477_v48 }
 0x12a   :  { %v164_v50 = vpop.f32.mrb[0].mxu0 }
 0x12b   :  { %v165_v51 = vadd.f32 %v328_v49, %v164_v50  ;;  %v398_v52 = vpop.f32.mrb[1].mxu0 }
 0x12d   :  { %v168_v53 = vmax.f32 %v165_v51, 0.0 }
 0x12f   :  { %432 = vmatmul.mubr.f32.vlgmr.msra.gmra.mrb[0].mxu1 %v168_v53 }
 0x202   :  { %v258_v55 = vpop.f32.mrb[0].mxu1 }
 0x203   :  { %v259_v56 = vadd.f32 %v331_v54, %v258_v55  ;;  %v433_v57 = vpop.f32.mrb[1].mxu1 }
 0x205   :  { %v262_v59 = vmax.f32 %v259_v56, 0.0 }
 0x207   :  { %v270_v60 = vmul.f32 %v332_v58, %v262_v59 }
 0x209   :  { %v272_v61 = vsel %vm271_vm3, %v270_v60, 0.0 }
 0x20a   :  { %273 = vadd.xlane.f32.xlu0 %v272_v61 }
 0x297   :  { %v274_v63 = vpop.xlane.xlu0 %273 }
 0x298   :  { %v277_v0 = vadd.f32 %v276_v62, %v274_v63 }
 0x29a   :  { %278 = vxpose.xlu0.b32.start.end [1/1] (short) (narrow) %v277_v0, 8 }
 0x31a   :  { %v294_v1 = vpop.trf.xlu0 }
 0x31b   :  { %311 = vst.msk [vmem:[#allocation9] sm:$0x1] %vm310_vm4, %v294_v1 }
 0x31c   :  { %565 = shalt.err (!%p562_p0)
}
 0x31d   :  { %s566_s6 = scalar_lea.hbm %s722_s7, 16 }
 0x31e   :  { %p567_p1 = scmp.ne.s32.totalorder %s722_s7, %s566_s6  ;;  %p570_p2 = scmp.lt.u32.totalorder %s566_s6, %s722_s7 }
 0x320   :  { %p572_p3 = pnand %p570_p2, %p567_p1 }
 0x322   :  { %575 = shalt.err (!%p572_p3)
}
 0x323   :  { %321 = dma.vmem_to_hbm [thread:$0]  %s319_s20, 16, %s722_s7, [#allocation5]  }
 0x324   :  { %580 = dma.done.wait [#allocation5], 16  }
 0x325   :  { %581 = vsyncadd [#allocation5], 4294967280 }
 0x326   :  { %325 = vsyncpa [#allocation4], 1 }
 0x327   :  { %326 = vsyncpa [#allocation7], 1 }
 0x328   :  { %327 = vsyncpa [#allocation5], 1 }

</bundles_post_ra>
